<compile_context>
chip_gen: v5e
topology: v5e:2x2
jax: 0.10.0
libtpu: 0.0.40
codegen_flags: <defaults>
</compile_context>

<pallas_src>
import functools
import math

import jax
import jax.numpy as jnp
from jax.experimental import pallas as pl
from jax.experimental.pallas import tpu as pltpu


def _fused_kernel(x_ref, w_ref, b_ref, o_ref):
    """One grid step: full-K matmul for one lane tile of the merged B*D axis.

    x_ref: (K, TILE_BD) bf16  zero-padded seq-first x with trailing dims merged
    w_ref: (N, K)       bf16  nn.Linear weight, resident across the grid
    b_ref: (N, 1)       f32   bias column (broadcast along lanes)
    o_ref: (N, TILE_BD) f32   output tile, single lane-dense store
    """
    nm = jnp.dot(w_ref[...], x_ref[...], preferred_element_type=jnp.float32)  # (N, TILE_BD)
    o_ref[...] = (nm + b_ref[...]).astype(o_ref.dtype)


def _pick_lane_tile(bd, cap=1024):
    """Largest multiple of 128 that divides bd and is <= cap; else the full axis (single block)."""
    if bd <= cap or bd % 128 != 0:
        return bd
    t = cap - cap % 128
    while t >= 128:
        if bd % t == 0:
            return t
        t -= 128
    return bd


@functools.partial(jax.jit, static_argnames=("pool_size",))
def linear_pooling_shortening(x, weight, bias, *, pool_size):
    """Exact reproduction of LinearPoolingShortening.forward.

    x:      (S, B, d_model) float32
    weight: (d_model, d_model * pool_size)   nn.Linear weight layout (used as-is)
    bias:   (d_model,)
    returns (d_model, B, d_model) float32
    """
    S, B, D = x.shape
    N, K = weight.shape
    assert N == D and K == D * pool_size, "weight must be (d_model, d_model*pool_size)"
    S_pad = -(-S // pool_size) * pool_size
    assert S_pad == K, (
        "LinearPoolingShortening requires padded seq length == d_model*pool_size")

    BD = B * D
    # Free trailing-dim merge (no data movement) + explicit zero pad of the sequence to K rows,
    # so the contraction operand is full-K and 128-aligned (no masked weight lane-slice).
    x2 = x.reshape(S, BD)
    if S < K:
        x2 = jnp.pad(x2, ((0, K - S), (0, 0)))
    x2 = x2.astype(jnp.bfloat16)
    w = weight.astype(jnp.bfloat16)
    b_col = bias.astype(jnp.float32).reshape(N, 1)

    tile_bd = _pick_lane_tile(BD)
    grid = (BD // tile_bd,)

    out2 = pl.pallas_call(
        _fused_kernel,
        out_shape=jax.ShapeDtypeStruct((N, BD), jnp.float32),
        grid=grid,
        in_specs=[
            pl.BlockSpec((K, tile_bd), lambda i: (0, i)),   # streamed x tile
            pl.BlockSpec((N, K), lambda i: (0, 0)),         # resident weight
            pl.BlockSpec((N, 1), lambda i: (0, 0)),         # resident bias column
        ],
        out_specs=pl.BlockSpec((N, tile_bd), lambda i: (0, i)),
        compiler_params=pltpu.CompilerParams(dimension_semantics=("parallel",)),
    )(x2, w, b_col)

    # out2[n, b*D + d] -> module layout (D, B, N): output-sized permute done by XLA outside
    # the kernel instead of per-batch XLU transposes + narrow masked stores inside it.
    return jnp.transpose(out2.reshape(N, B, D), (2, 1, 0)).astype(x.dtype)


if __name__ == "__main__":
    d_model = 32
    pool_size = 4
    batch = 2
    seq = 126  # pads to 128 == d_model * pool_size (required by the module's view+linear)

    key = jax.random.PRNGKey(0)
    kx, kw, kb = jax.random.split(key, 3)

    x = jax.random.normal(kx, (seq, batch, d_model), dtype=jnp.float32)

    # Deterministic nn.Linear-style init: U(-1/sqrt(in), 1/sqrt(in))
    in_features = d_model * pool_size
    bound = 1.0 / math.sqrt(in_features)
    weight = jax.random.uniform(kw, (d_model, in_features), jnp.float32, -bound, bound)
    bias = jax.random.uniform(kb, (d_model,), jnp.float32, -bound, bound)

    out = linear_pooling_shortening(x, weight, bias, pool_size=pool_size)
    out = jax.block_until_ready(out)
    assert out.shape == (d_model, batch, d_model)

    # Pure-JAX reference of the exact PyTorch forward.
    pad = (-seq) % pool_size
    x_pad = jnp.concatenate([x, jnp.zeros((pad, batch, d_model), x.dtype)], axis=0)
    y = jnp.transpose(x_pad, (2, 1, 0))                                   # (D, B, S_pad)

    # (1) Tight check vs a reference using the same bf16 operand rounding as the kernel
    #     (f32 accumulation in both; only summation order differs).
    ref_q = jnp.einsum(
        "dbs,ns->dbn",
        y.astype(jnp.bfloat16).astype(jnp.float32),
        weight.astype(jnp.bfloat16).astype(jnp.float32),
        precision=jax.lax.Precision.HIGHEST,
    ) + bias
    assert jnp.allclose(out, ref_q, atol=1e-3, rtol=1e-3)

    # (2) Loose check vs the full-f32 module forward (difference = bf16 operand quantization only).
    ref_f32 = jnp.einsum("dbs,ns->dbn", y, weight,
                         precision=jax.lax.Precision.HIGHEST) + bias
    assert jnp.allclose(out, ref_f32, atol=5e-2, rtol=5e-2)

    print("KERNEL_OK")
</pallas_src>

<mosaic_0001>
module attributes {stable_mosaic.version = 11 : i64} {
  func.func @_fused_kernel(%arg0: i32, %arg1: memref<128x64xbf16, #tpu.memory_space<vmem>>, %arg2: memref<32x128xbf16, #tpu.memory_space<vmem>>, %arg3: memref<32x1xf32, #tpu.memory_space<vmem>>, %arg4: memref<32x64xf32, #tpu.memory_space<vmem>>) attributes {dimension_semantics = [#tpu.dimension_semantics<parallel>], iteration_bounds = array<i64: 1>, scalar_prefetch = 0 : i64, scratch_operands = 0 : i64, tpu.core_type = #tpu.core_type<tc>, window_params = [{transform_indices = @transform_0, window_bounds = array<i64: 128, 64>}, {pipeline_mode = #tpu.pipeline_mode<synchronous>, transform_indices = @transform_1, window_bounds = array<i64: 32, 128>}, {pipeline_mode = #tpu.pipeline_mode<synchronous>, transform_indices = @transform_2, window_bounds = array<i64: 32, 1>}, {transform_indices = @transform_3, window_bounds = array<i64: 32, 64>}]} {
    %c0 = arith.constant 0 : index
    %c0_0 = arith.constant 0 : index
    %0 = vector.load %arg2[%c0, %c0_0] : memref<32x128xbf16, #tpu.memory_space<vmem>>, vector<32x128xbf16>
    %c0_1 = arith.constant 0 : index
    %c0_2 = arith.constant 0 : index
    %1 = vector.load %arg1[%c0_1, %c0_2] : memref<128x64xbf16, #tpu.memory_space<vmem>>, vector<128x64xbf16>
    %cst = arith.constant dense<0.000000e+00> : vector<32x64xf32>
    %2 = tpu.matmul %0, %1, %cst {dimension_numbers = #tpu.dot_dimension_numbers<[1], [0], [0], [1], [0, 0, 1, 1], [], []>} : vector<32x128xbf16>, vector<128x64xbf16>, vector<32x64xf32> -> vector<32x64xf32>
    %c0_3 = arith.constant 0 : index
    %c0_4 = arith.constant 0 : index
    %3 = vector.load %arg3[%c0_3, %c0_4] : memref<32x1xf32, #tpu.memory_space<vmem>>, vector<32x1xf32>
    %4 = vector.broadcast %3 : vector<32x1xf32> to vector<32x64xf32>
    %5 = arith.addf %2, %4 : vector<32x64xf32>
    %c0_5 = arith.constant 0 : index
    %c0_6 = arith.constant 0 : index
    %6 = vector.load %arg4[%c0_5, %c0_6] : memref<32x64xf32, #tpu.memory_space<vmem>>, vector<32x64xf32>
    tpu.vector_store %arg4[%c0_5, %c0_6], %5 {strides = array<i32>} : memref<32x64xf32, #tpu.memory_space<vmem>>, vector<32x64xf32>,
    return
  }
  func.func @transform_0(%arg0: i32) -> (i32, i32) {
    %c0_i32 = arith.constant 0 : i32
    %c0_i32_0 = arith.constant 0 : i32
    return %c0_i32, %arg0 : i32, i32
  }
  func.func @transform_1(%arg0: i32) -> (i32, i32) {
    %c0_i32 = arith.constant 0 : i32
    %c0_i32_0 = arith.constant 0 : i32
    %c0_i32_1 = arith.constant 0 : i32
    return %c0_i32, %c0_i32_0 : i32, i32
  }
  func.func @transform_2(%arg0: i32) -> (i32, i32) {
    %c0_i32 = arith.constant 0 : i32
    %c0_i32_0 = arith.constant 0 : i32
    %c0_i32_1 = arith.constant 0 : i32
    return %c0_i32, %c0_i32_0 : i32, i32
  }
  func.func @transform_3(%arg0: i32) -> (i32, i32) {
    %c0_i32 = arith.constant 0 : i32
    %c0_i32_0 = arith.constant 0 : i32
    return %c0_i32, %arg0 : i32, i32
  }
}

</mosaic_0001>

<bundles_post_ra>
// kernel: linear_pooling_shortening.1
= control target key start
LH: loop header
LB: loop body
LE: loop exit
PB: predicated region body
PF: predicated region fallthrough
CT: control target
= control target key end

     0   :  { %v207_v2 = vmov 0   ;;  %vm137_vm0 = vcmask 523264   ;;  %s282_s0 = inlined_call_operand.vmem [shape: bf16[128,64], index: 0, kind: input, shape index: {}]   ;;  %s283_s2 = inlined_call_operand.vmem [shape: f32[32,1], index: 2, kind: input, shape index: {}]   ;;  %s284_s1 = inlined_call_operand.vmem [shape: bf16[32,128], index: 1, kind: input, shape index: {}]   ;;  %s285_s3 = inlined_call_operand.vmem [shape: f32[32,64], index: 3, kind: output, shape index: {}]  }
   0x1   :  { %v195_v0 = vld [vmem:[%s282_s0 + $0x38] sm:$0xff]  ;;  %v194_v1 = vld [vmem:[%s282_s0 + $0x30] sm:$0xff]  ;;  %206 = vset.pattern.permute.xlu1 %v207_v2  ;;  %205 = vset.pattern.permute.xlu0 %v207_v2  ;;  %v34_v4 = vld [vmem:[%s283_s2] sm:$0xff] }
   0x2   :  { %118 = vmatpush.bf16.msra.mxu0 %v195_v0  ;;  %196 = vmatpush.bf16.msra.mxu1 %v195_v0  ;;  %v36_v3 = vld [vmem:[%s283_s2 + $0x10] sm:$0xff]  ;;  %v193_v5 = vld [vmem:[%s282_s0 + $0x28] sm:$0xff]  ;;  %v37_v6 = vld [vmem:[%s283_s2 + $0x18] sm:$0xff] }
   0x3   :  { %50 = vperm.xlu1 %206, %v36_v3   ;;  %40 = vperm.xlu0 %205, %v34_v4   ;;  %v35_v7 = vld [vmem:[%s283_s2 + $0x8] sm:$0xff]  ;;  %v192_v8 = vld [vmem:[%s282_s0 + $0x20] sm:$0xff]  ;;  %v191_v9 = vld [vmem:[%s282_s0 + $0x18] sm:$0xff] }
   0x4   :  { %v190_v10 = vld [vmem:[%s282_s0 + $0x10] sm:$0xff]  ;;  %v189_v11 = vld [vmem:[%s282_s0 + $0x8] sm:$0xff]  ;;  %v188_v12 = vld [vmem:[%s282_s0] sm:$0xff] }
   0x5   :  { %v186_v13 = vld [vmem:[%s284_s1] sm:$0xff]  ;;  %v187_v14 = vld [vmem:[%s284_s1 + $0x8] sm:$0xff] }
   0x6   :  { %119 = vmatpush.bf16.msra.mxu0 %v194_v1  ;;  %197 = vmatpush.bf16.msra.mxu1 %v194_v1 }
   0xa   :  { %120 = vmatpush.bf16.msra.mxu0 %v193_v5  ;;  %198 = vmatpush.bf16.msra.mxu1 %v193_v5 }
   0xb   :  { %55 = vperm.xlu1 %206, %v37_v6   ;;  %45 = vperm.xlu0 %205, %v35_v7  }
   0xe   :  { %121 = vmatpush.bf16.msra.mxu0 %v192_v8  ;;  %199 = vmatpush.bf16.msra.mxu1 %v192_v8 }
  0x12   :  { %122 = vmatpush.bf16.msra.mxu0 %v191_v9  ;;  %200 = vmatpush.bf16.msra.mxu1 %v191_v9 }
  0x16   :  { %123 = vmatpush.bf16.msra.mxu0 %v190_v10  ;;  %201 = vmatpush.bf16.msra.mxu1 %v190_v10 }
  0x1a   :  { %124 = vmatpush.bf16.msra.mxu0 %v189_v11  ;;  %202 = vmatpush.bf16.msra.mxu1 %v189_v11 }
  0x1e   :  { %125 = vmatpush.bf16.msra.mxu0 %v188_v12  ;;  %203 = vmatpush.bf16.msra.mxu1 %v188_v12 }
  0x21   :  { %126 = vmatmul.bf16.vlgmr.msra.gmra.mxu0 %v186_v13  ;;  %131 = vmatmul.bf16.vlgmr.msra.gmra.mxu1 %v187_v14 }
  0x75   :  { %v51_v15 = vpop.permute.xlu1 %50  ;;  %v41_v16 = vpop.permute.xlu0 %40 }
  0x7d   :  { %v56_v21 = vpop.permute.xlu1 %55  ;;  %v46_v22 = vpop.permute.xlu0 %45 }
  0x9e   :  { %v127_v17 = vpop.f32.mrf.mxu0  ;;  %v132_v18 = vpop.f32.mrf.mxu1 }
  0x9f   :  { %v128_v19 = vadd.f32 %v127_v17, %v41_v16  ;;  %v133_v20 = vadd.f32 %v132_v18, %v51_v15 }
  0xa1   :  { %138 = vst.msk [vmem:[%s285_s3] sm:$0xff] %vm137_vm0, %v128_v19 }
  0xa2   :  { %140 = vst.msk [vmem:[%s285_s3 + $0x10] sm:$0xff] %vm137_vm0, %v133_v20 }
  0xa6   :  { %v129_v23 = vpop.f32.mrf.mxu0  ;;  %v134_v24 = vpop.f32.mrf.mxu1 }
  0xa7   :  { %v130_v25 = vadd.f32 %v129_v23, %v46_v22  ;;  %v135_v26 = vadd.f32 %v134_v24, %v56_v21 }
  0xa9   :  { %139 = vst.msk [vmem:[%s285_s3 + $0x8] sm:$0xff] %vm137_vm0, %v130_v25 }
  0xaa   :  { %141 = vst.msk [vmem:[%s285_s3 + $0x18] sm:$0xff] %vm137_vm0, %v135_v26 }

</bundles_post_ra>
